<compile_context>
chip_gen: v5e
topology: v5e:2x2
jax: 0.10.0
libtpu: 0.0.40
codegen_flags: <defaults>
</compile_context>

<pallas_src>
import functools
import math

import jax
import jax.numpy as jnp
from jax.experimental import pallas as pl
from jax.experimental.pallas import tpu as pltpu


_MASK_FILL = -1e30   # finite fill: fully-masked rows stay NaN-free (documented deviation
                     # from torch's -inf semantics, which yields NaN rows)


# ---------------------------------------------------------------------------
# Per-generation sizing helpers
# ---------------------------------------------------------------------------
def _vmem_limit_bytes():
    """~75% of this generation's VMEM (v5e/v6e: 128 MiB -> 96 MiB; v7x: 64 -> 48)."""
    cap = None
    try:
        cap = getattr(pltpu.get_tpu_info(), "vmem_capacity_bytes", None)
    except Exception:
        cap = None
    if not cap:
        cap = 64 * 1024 * 1024          # conservative fallback (v7x per-TC VMEM)
    return int(cap) * 3 // 4


def _bf16_eup_ok():
    """bf16 exp only on v6e / v7x (v5e and older have no bf16 EUP/VPU)."""
    try:
        kind = jax.devices()[0].device_kind.lower()
    except Exception:
        return False
    return ("v6" in kind) or ("v7" in kind)


def _divisors_desc(n):
    return [d for d in range(n, 0, -1) if n % d == 0]


def _plan_tiles(bh, lq, *, per_step_fn, tile_q_cap, budget):
    """Pick (bh_tile, tile_q) under a double-buffered VMEM budget.

    tile_q shrinks first if the per-step footprint exceeds the budget; bh_tile then grows
    as far as the budget allows while keeping >= 2 steps on the parallel grid axes so both
    v7x TensorCores stay busy (no-op on single-TC v5e/v6e).
    """
    q_divs = [t for t in _divisors_desc(lq) if t <= tile_q_cap] or [1]
    tile_q = q_divs[-1]                       # fallback: smallest divisor
    for t in q_divs:                          # largest -> smallest
        if per_step_fn(1, t) <= budget:
            tile_q = t
            break

    bh_tile = 1
    max_parallel_steps = bh * (lq // tile_q)
    for cand in sorted(c for c in range(1, bh + 1) if bh % c == 0):
        if per_step_fn(cand, tile_q) > budget:
            continue
        if max_parallel_steps >= 2 and (bh // cand) * (lq // tile_q) < 2:
            continue
        bh_tile = cand
    return bh_tile, tile_q


# ---------------------------------------------------------------------------
# Kernels
# ---------------------------------------------------------------------------
def _sdpa_exact_kernel(*refs, has_mask):
    """Exact softmax over the full key axis for one (bh_tile, tile_q) block."""
    if has_mask:
        q_ref, k_ref, v_ref, bias_ref, out_ref, attn_ref = refs
    else:
        q_ref, k_ref, v_ref, out_ref, attn_ref = refs

    # q/k/v arrive as bf16 with 1/sqrt(d_k) pre-folded into q (wrapper-side).
    q = q_ref[...]                                   # (B, TQ, D)
    k = k_ref[...]                                   # (B, LKV, D)
    v = v_ref[...]                                   # (B, LKV, D)

    # scores = q @ k^T, contracting last dims (no explicit transpose of k).
    scores = jax.lax.dot_general(
        q, k, (((2,), (2,)), ((0,), (0,))),
        preferred_element_type=jnp.float32)          # (B, TQ, LKV) f32
    if has_mask:
        # Bias block may be (1, TQ, LKV) (shared mask) — broadcasts over the head dim.
        scores = scores + bias_ref[...].astype(jnp.float32)

    # Numerically stable softmax along keys (f32: weights are user-facing).
    row_max = jnp.max(scores, axis=-1, keepdims=True)
    p = jnp.exp(scores - row_max)
    denom = jnp.sum(p, axis=-1, keepdims=True)
    inv = 1.0 / denom                                # exact per-row divide (only TQ rows)
    attn = p * inv

    out = jax.lax.dot_general(
        attn.astype(jnp.bfloat16), v, (((2,), (1,)), ((0,), (0,))),
        preferred_element_type=jnp.float32)          # (B, TQ, D)

    out_ref[...] = out.astype(out_ref.dtype)
    attn_ref[...] = attn.astype(attn_ref.dtype)


def _sdpa_flash_kernel(*refs, has_mask, exp_bf16):
    """Flash-style online softmax; key axis is the innermost (arbitrary) grid axis."""
    if has_mask:
        q_ref, k_ref, v_ref, bias_ref, out_ref, m_sc, l_sc, acc_sc = refs
    else:
        q_ref, k_ref, v_ref, out_ref, m_sc, l_sc, acc_sc = refs

    kv = pl.program_id(2)

    @pl.when(kv == 0)
    def _():
        m_sc[...] = jnp.full_like(m_sc, -jnp.inf)

    q = q_ref[...]                                   # bf16, scale pre-folded (wrapper)
    k = k_ref[...]
    v = v_ref[...]

    s = jax.lax.dot_general(
        q, k, (((2,), (2,)), ((0,), (0,))),
        preferred_element_type=jnp.float32)          # (B, TQ, TKV)
    if has_mask:
        s = s + bias_ref[...].astype(jnp.float32)    # finite fill => no NaNs

    m_prev = m_sc[...]
    m_new = jnp.maximum(m_prev, jnp.max(s, axis=-1, keepdims=True))
    s_shift = s - m_new
    if exp_bf16:
        p = jnp.exp(s_shift.astype(jnp.bfloat16))    # bf16 EUP (v6e/v7x only)
    else:
        p = jnp.exp(s_shift)                         # f32 EUP (v5e)
    l_cur = jnp.sum(p.astype(jnp.float32), axis=-1, keepdims=True)
    pv = jax.lax.dot_general(
        p.astype(jnp.bfloat16), v, (((2,), (1,)), ((0,), (0,))),
        preferred_element_type=jnp.float32)

    @pl.when(kv == 0)
    def _():                                         # no alpha rescale on the first step
        l_sc[...] = l_cur
        acc_sc[...] = pv

    @pl.when(kv > 0)
    def _():
        alpha = jnp.exp(m_prev - m_new)
        l_sc[...] = alpha * l_sc[...] + l_cur
        acc_sc[...] = alpha * acc_sc[...] + pv

    m_sc[...] = m_new

    @pl.when(kv == pl.num_programs(2) - 1)
    def _():
        out_ref[...] = (acc_sc[...] *
                        pl.reciprocal(l_sc[...], approx=True)).astype(out_ref.dtype)


# ---------------------------------------------------------------------------
# pallas_call wrappers
# ---------------------------------------------------------------------------
def _sdpa_exact(q, k, v, bias, bias_shared, out_dtype, weights_dtype):
    bh, lq, d = q.shape
    lkv = k.shape[1]
    has_mask = bias is not None
    w_bytes = jnp.dtype(weights_dtype).itemsize
    out_bytes = jnp.dtype(out_dtype).itemsize

    vmem_limit = _vmem_limit_bytes()
    budget = int(vmem_limit * 0.85)

    def per_step(bh_tile, tile_q):
        # Double-buffer-aware (factor 2 on every pipelined input/output block).
        b = 2 * bh_tile * tile_q * d * 2             # q block (bf16)
        b += 2 * 2 * bh_tile * lkv * d * 2           # k + v blocks (full key axis)
        b += 2 * bh_tile * tile_q * d * out_bytes    # output block
        b += 2 * bh_tile * tile_q * lkv * w_bytes    # attention-weights block
        if has_mask:
            bias_tile = 1 if bias_shared else bh_tile
            b += 2 * bias_tile * tile_q * lkv * 2    # bias block (bf16)
        return b

    bh_tile, tile_q = _plan_tiles(bh, lq, per_step_fn=per_step,
                                  tile_q_cap=512, budget=budget)
    grid = (bh // bh_tile, lq // tile_q)

    in_specs = [
        pl.BlockSpec((bh_tile, tile_q, d), lambda b, i: (b, i, 0)),
        pl.BlockSpec((bh_tile, lkv, d), lambda b, i: (b, 0, 0)),
        pl.BlockSpec((bh_tile, lkv, d), lambda b, i: (b, 0, 0)),
    ]
    args = [q, k, v]
    if has_mask:
        if bias_shared:
            # Single shared copy in HBM; every head block reads BH-block 0.
            in_specs.append(pl.BlockSpec((1, tile_q, lkv), lambda b, i: (0, i, 0)))
        else:
            in_specs.append(pl.BlockSpec((bh_tile, tile_q, lkv), lambda b, i: (b, i, 0)))
        args.append(bias)

    out_specs = [
        pl.BlockSpec((bh_tile, tile_q, d), lambda b, i: (b, i, 0)),
        pl.BlockSpec((bh_tile, tile_q, lkv), lambda b, i: (b, i, 0)),
    ]
    out_shape = (
        jax.ShapeDtypeStruct((bh, lq, d), out_dtype),
        jax.ShapeDtypeStruct((bh, lq, lkv), weights_dtype),
    )

    kernel = functools.partial(_sdpa_exact_kernel, has_mask=has_mask)

    return pl.pallas_call(
        kernel,
        out_shape=out_shape,
        grid_spec=pltpu.PrefetchScalarGridSpec(
            num_scalar_prefetch=0,
            grid=grid,
            in_specs=in_specs,
            out_specs=out_specs,
        ),
        compiler_params=pltpu.CompilerParams(
            dimension_semantics=("parallel", "parallel"),
            vmem_limit_bytes=vmem_limit,
        ),
    )(*args)


def _sdpa_flash(q, k, v, bias, bias_shared, out_dtype):
    bh, lq, d = q.shape
    lkv = k.shape[1]
    has_mask = bias is not None
    out_bytes = jnp.dtype(out_dtype).itemsize

    vmem_limit = _vmem_limit_bytes()
    budget = int(vmem_limit * 0.85)

    kv_divs = [t for t in _divisors_desc(lkv) if t <= 512]
    tile_kv = kv_divs[0] if kv_divs else lkv

    def per_step(bh_tile, tile_q):
        b = 2 * bh_tile * tile_q * d * 2             # q block (bf16)
        b += 2 * 2 * bh_tile * tile_kv * d * 2       # k + v blocks
        b += 2 * bh_tile * tile_q * d * out_bytes    # output block
        if has_mask:
            bias_tile = 1 if bias_shared else bh_tile
            b += 2 * bias_tile * tile_q * tile_kv * 2
        b += bh_tile * tile_q * (d + 2) * 4          # m/l/acc scratch (single-buffered)
        return b

    bh_tile, tile_q = _plan_tiles(bh, lq, per_step_fn=per_step,
                                  tile_q_cap=512, budget=budget)
    grid = (bh // bh_tile, lq // tile_q, lkv // tile_kv)

    in_specs = [
        pl.BlockSpec((bh_tile, tile_q, d), lambda b, i, j: (b, i, 0)),
        pl.BlockSpec((bh_tile, tile_kv, d), lambda b, i, j: (b, j, 0)),
        pl.BlockSpec((bh_tile, tile_kv, d), lambda b, i, j: (b, j, 0)),
    ]
    args = [q, k, v]
    if has_mask:
        if bias_shared:
            in_specs.append(pl.BlockSpec((1, tile_q, tile_kv), lambda b, i, j: (0, i, j)))
        else:
            in_specs.append(
                pl.BlockSpec((bh_tile, tile_q, tile_kv), lambda b, i, j: (b, i, j)))
        args.append(bias)

    kernel = functools.partial(_sdpa_flash_kernel, has_mask=has_mask,
                               exp_bf16=_bf16_eup_ok())

    return pl.pallas_call(
        kernel,
        out_shape=jax.ShapeDtypeStruct((bh, lq, d), out_dtype),
        grid_spec=pltpu.PrefetchScalarGridSpec(
            num_scalar_prefetch=0,
            grid=grid,
            in_specs=in_specs,
            out_specs=pl.BlockSpec((bh_tile, tile_q, d), lambda b, i, j: (b, i, 0)),
            scratch_shapes=[
                pltpu.VMEM((bh_tile, tile_q, 1), jnp.float32),   # running max
                pltpu.VMEM((bh_tile, tile_q, 1), jnp.float32),   # running denom
                pltpu.VMEM((bh_tile, tile_q, d), jnp.float32),   # output accumulator
            ],
        ),
        compiler_params=pltpu.CompilerParams(
            dimension_semantics=("parallel", "parallel", "arbitrary"),
            vmem_limit_bytes=vmem_limit,
        ),
    )(*args)


def scaled_dot_product_attention(q, k, v, mask=None, *,
                                 return_weights=True, weights_dtype=None):
    """q, k, v: [BH, L, D]; mask: [Lq, Lkv], [1, Lq, Lkv] or [BH, Lq, Lkv], nonzero = keep.

    return_weights=True matches the PyTorch module (output, attn_weights); pass
    weights_dtype=jnp.bfloat16 to halve the dominant O(Lq*Lkv) weights writeback.
    return_weights=False uses the fused flash path (output only, no O(L^2) HBM traffic).
    """
    bh, lq, d = q.shape
    lkv = k.shape[1]
    assert k.shape == (bh, lkv, d) and v.shape == (bh, lkv, d)

    out_dtype = q.dtype
    scale = 1.0 / math.sqrt(d)

    # Wrapper-boundary prep: fold 1/sqrt(d_k) into q and ship q/k/v as bf16 so the
    # HBM->VMEM DMA moves half the bytes and the kernel never rescales/recasts per step.
    q_b = (q.astype(jnp.float32) * scale).astype(jnp.bfloat16)
    k_b = k.astype(jnp.bfloat16)
    v_b = v.astype(jnp.bfloat16)

    bias = None
    bias_shared = True
    if mask is not None:
        mask = jnp.asarray(mask)
        if mask.ndim == 2:
            mask = mask[None]
        assert mask.ndim == 3 and mask.shape[1:] == (lq, lkv)
        bias_shared = (mask.shape[0] == 1)
        if not bias_shared:
            assert mask.shape[0] == bh
        # Additive bf16 bias with a large finite fill (no NaNs for fully-masked rows).
        # NOT broadcast along BH: a shared mask is stored and streamed once.
        bias = jnp.where(mask == 0, jnp.float32(_MASK_FILL),
                         jnp.float32(0.0)).astype(jnp.bfloat16)

    if return_weights:
        if weights_dtype is None:
            weights_dtype = out_dtype
        return _sdpa_exact(q_b, k_b, v_b, bias, bias_shared, out_dtype, weights_dtype)
    return _sdpa_flash(q_b, k_b, v_b, bias, bias_shared, out_dtype)


# ---------------------------------------------------------------------------
# Reference + smoke test
# ---------------------------------------------------------------------------
def _reference(q, k, v, mask):
    d_k = q.shape[-1]
    scores = jnp.einsum("bqd,bkd->bqk", q, k) / math.sqrt(d_k)
    if mask is not None:
        scores = jnp.where(mask == 0, -jnp.inf, scores)
    attn = jax.nn.softmax(scores, axis=-1)
    out = jnp.einsum("bqk,bkd->bqd", attn, v)
    return out, attn


if __name__ == "__main__":
    key = jax.random.PRNGKey(0)
    B, H, Lq, Lkv, D = 2, 2, 8, 8, 32
    BH = B * H

    kq, kk, kv = jax.random.split(key, 3)
    q = jax.random.normal(kq, (BH, Lq, D), dtype=jnp.float32)
    k = jax.random.normal(kk, (BH, Lkv, D), dtype=jnp.float32)
    v = jax.random.normal(kv, (BH, Lkv, D), dtype=jnp.float32)

    # Causal mask, shared across batch*heads (exercises the shared-bias path).
    causal = jnp.tril(jnp.ones((Lq, Lkv), dtype=jnp.int32))

    # Module-semantics path: (output, attention weights).
    out, attn = scaled_dot_product_attention(q, k, v, causal)
    out, attn = jax.block_until_ready((out, attn))

    ref_out, ref_attn = _reference(q, k, v, causal)
    # bf16 MXU matmuls => bf16-appropriate tolerances; weights divide is exact in f32.
    assert bool(jnp.all(jnp.isfinite(out))) and bool(jnp.all(jnp.isfinite(attn)))
    assert jnp.allclose(out, ref_out, atol=5e-2, rtol=5e-2)
    assert jnp.allclose(attn, ref_attn, atol=5e-2, rtol=5e-2)
    assert jnp.allclose(jnp.sum(attn, axis=-1), 1.0, atol=5e-3)

    # Per-head mask (exercises the non-shared bias path).
    mask3 = jnp.broadcast_to(causal, (BH, Lq, Lkv))
    out3, attn3 = scaled_dot_product_attention(q, k, v, mask3)
    out3, attn3 = jax.block_until_ready((out3, attn3))
    assert jnp.allclose(out3, ref_out, atol=5e-2, rtol=5e-2)
    assert jnp.allclose(attn3, ref_attn, atol=5e-2, rtol=5e-2)

    # Fused flash path (no weights output).
    out_flash = scaled_dot_product_attention(q, k, v, causal, return_weights=False)
    out_flash = jax.block_until_ready(out_flash)
    assert jnp.allclose(out_flash, ref_out, atol=5e-2, rtol=5e-2)

    # No-mask path.
    out_nm, attn_nm = scaled_dot_product_attention(q, k, v, None)
    out_nm, attn_nm = jax.block_until_ready((out_nm, attn_nm))
    ref_out_nm, ref_attn_nm = _reference(q, k, v, None)
    assert jnp.allclose(out_nm, ref_out_nm, atol=5e-2, rtol=5e-2)
    assert jnp.allclose(attn_nm, ref_attn_nm, atol=5e-2, rtol=5e-2)

    print("KERNEL_OK")
</pallas_src>

<mosaic_0001>
module attributes {stable_mosaic.version = 11 : i64} {
  func.func @_sdpa_exact_kernel(%arg0: i32, %arg1: i32, %arg2: memref<2x8x32xbf16, #tpu.memory_space<vmem>>, %arg3: memref<2x8x32xbf16, #tpu.memory_space<vmem>>, %arg4: memref<2x8x32xbf16, #tpu.memory_space<vmem>>, %arg5: memref<1x8x8xbf16, #tpu.memory_space<vmem>>, %arg6: memref<2x8x32xf32, #tpu.memory_space<vmem>>, %arg7: memref<2x8x8xf32, #tpu.memory_space<vmem>>) attributes {dimension_semantics = [#tpu.dimension_semantics<parallel>, #tpu.dimension_semantics<parallel>], iteration_bounds = array<i64: 2, 1>, scalar_prefetch = 0 : i64, scratch_operands = 0 : i64, tpu.core_type = #tpu.core_type<tc>, window_params = [{transform_indices = @transform_0, window_bounds = array<i64: 2, 8, 32>}, {transform_indices = @transform_1, window_bounds = array<i64: 2, 8, 32>}, {transform_indices = @transform_2, window_bounds = array<i64: 2, 8, 32>}, {transform_indices = @transform_3, window_bounds = array<i64: 1, 8, 8>}, {transform_indices = @transform_4, window_bounds = array<i64: 2, 8, 32>}, {transform_indices = @transform_5, window_bounds = array<i64: 2, 8, 8>}]} {
    %c0 = arith.constant 0 : index
    %c0_0 = arith.constant 0 : index
    %c0_1 = arith.constant 0 : index
    %0 = vector.load %arg2[%c0, %c0_0, %c0_1] : memref<2x8x32xbf16, #tpu.memory_space<vmem>>, vector<2x8x32xbf16>
    %c0_2 = arith.constant 0 : index
    %c0_3 = arith.constant 0 : index
    %c0_4 = arith.constant 0 : index
    %1 = vector.load %arg3[%c0_2, %c0_3, %c0_4] : memref<2x8x32xbf16, #tpu.memory_space<vmem>>, vector<2x8x32xbf16>
    %c0_5 = arith.constant 0 : index
    %c0_6 = arith.constant 0 : index
    %c0_7 = arith.constant 0 : index
    %2 = vector.load %arg4[%c0_5, %c0_6, %c0_7] : memref<2x8x32xbf16, #tpu.memory_space<vmem>>, vector<2x8x32xbf16>
    %cst = arith.constant dense<0.000000e+00> : vector<2x8x8xf32>
    %3 = tpu.matmul %0, %1, %cst {dimension_numbers = #tpu.dot_dimension_numbers<[2], [2], [1], [1], [0, 0, 0, 1, 1, 1], [0], [0]>} : vector<2x8x32xbf16>, vector<2x8x32xbf16>, vector<2x8x8xf32> -> vector<2x8x8xf32>
    %c0_8 = arith.constant 0 : index
    %c0_9 = arith.constant 0 : index
    %c0_10 = arith.constant 0 : index
    %4 = vector.load %arg5[%c0_8, %c0_9, %c0_10] : memref<1x8x8xbf16, #tpu.memory_space<vmem>>, vector<1x8x8xbf16>
    %5 = arith.extf %4 : vector<1x8x8xbf16> to vector<1x8x8xf32>
    %6 = vector.broadcast %5 : vector<1x8x8xf32> to vector<2x8x8xf32>
    %7 = arith.addf %3, %6 : vector<2x8x8xf32>
    %cst_11 = arith.constant dense<0xFF800000> : vector<2x8xf32>
    %8 = vector.multi_reduction <maximumf>, %7, %cst_11 [2] : vector<2x8x8xf32> to vector<2x8xf32>
    %9 = vector.shape_cast %8 : vector<2x8xf32> to vector<2x8x1xf32>
    %10 = vector.broadcast %9 : vector<2x8x1xf32> to vector<2x8x8xf32>
    %11 = arith.subf %7, %10 : vector<2x8x8xf32>
    %12 = math.exp %11 : vector<2x8x8xf32>
    %cst_12 = arith.constant dense<0.000000e+00> : vector<2x8xf32>
    %13 = vector.multi_reduction <add>, %12, %cst_12 [2] : vector<2x8x8xf32> to vector<2x8xf32>
    %14 = vector.shape_cast %13 : vector<2x8xf32> to vector<2x8x1xf32>
    %cst_13 = arith.constant 1.000000e+00 : f32
    %15 = vector.broadcast %cst_13 : f32 to vector<2x8x1xf32>
    %16 = arith.divf %15, %14 : vector<2x8x1xf32>
    %17 = vector.broadcast %16 : vector<2x8x1xf32> to vector<2x8x8xf32>
    %18 = arith.mulf %12, %17 : vector<2x8x8xf32>
    %19 = arith.truncf %18 : vector<2x8x8xf32> to vector<2x8x8xbf16>
    %cst_14 = arith.constant dense<0.000000e+00> : vector<2x8x32xf32>
    %20 = tpu.matmul %19, %2, %cst_14 {dimension_numbers = #tpu.dot_dimension_numbers<[2], [1], [1], [2], [0, 0, 0, 1, 1, 2], [0], [0]>} : vector<2x8x8xbf16>, vector<2x8x32xbf16>, vector<2x8x32xf32> -> vector<2x8x32xf32>
    %c0_15 = arith.constant 0 : index
    %c0_16 = arith.constant 0 : index
    %c0_17 = arith.constant 0 : index
    %21 = vector.load %arg6[%c0_15, %c0_16, %c0_17] : memref<2x8x32xf32, #tpu.memory_space<vmem>>, vector<2x8x32xf32>
    tpu.vector_store %arg6[%c0_15, %c0_16, %c0_17], %20 {strides = array<i32>} : memref<2x8x32xf32, #tpu.memory_space<vmem>>, vector<2x8x32xf32>,
    %c0_18 = arith.constant 0 : index
    %c0_19 = arith.constant 0 : index
    %c0_20 = arith.constant 0 : index
    %22 = vector.load %arg7[%c0_18, %c0_19, %c0_20] : memref<2x8x8xf32, #tpu.memory_space<vmem>>, vector<2x8x8xf32>
    tpu.vector_store %arg7[%c0_18, %c0_19, %c0_20], %18 {strides = array<i32>} : memref<2x8x8xf32, #tpu.memory_space<vmem>>, vector<2x8x8xf32>,
    return
  }
  func.func @transform_0(%arg0: i32, %arg1: i32) -> (i32, i32, i32) {
    %c0_i32 = arith.constant 0 : i32
    %c0_i32_0 = arith.constant 0 : i32
    return %arg0, %arg1, %c0_i32 : i32, i32, i32
  }
  func.func @transform_1(%arg0: i32, %arg1: i32) -> (i32, i32, i32) {
    %c0_i32 = arith.constant 0 : i32
    %c0_i32_0 = arith.constant 0 : i32
    %c0_i32_1 = arith.constant 0 : i32
    return %arg0, %c0_i32, %c0_i32_0 : i32, i32, i32
  }
  func.func @transform_2(%arg0: i32, %arg1: i32) -> (i32, i32, i32) {
    %c0_i32 = arith.constant 0 : i32
    %c0_i32_0 = arith.constant 0 : i32
    %c0_i32_1 = arith.constant 0 : i32
    return %arg0, %c0_i32, %c0_i32_0 : i32, i32, i32
  }
  func.func @transform_3(%arg0: i32, %arg1: i32) -> (i32, i32, i32) {
    %c0_i32 = arith.constant 0 : i32
    %c0_i32_0 = arith.constant 0 : i32
    %c0_i32_1 = arith.constant 0 : i32
    return %c0_i32, %arg1, %c0_i32_0 : i32, i32, i32
  }
  func.func @transform_4(%arg0: i32, %arg1: i32) -> (i32, i32, i32) {
    %c0_i32 = arith.constant 0 : i32
    %c0_i32_0 = arith.constant 0 : i32
    return %arg0, %arg1, %c0_i32 : i32, i32, i32
  }
  func.func @transform_5(%arg0: i32, %arg1: i32) -> (i32, i32, i32) {
    %c0_i32 = arith.constant 0 : i32
    %c0_i32_0 = arith.constant 0 : i32
    return %arg0, %arg1, %c0_i32 : i32, i32, i32
  }
}

</mosaic_0001>

<bundles_post_ra>
// kernel: tpu_custom_call.1
= control target key start
LH: loop header
LB: loop body
LE: loop exit
PB: predicated region body
PF: predicated region fallthrough
CT: control target
= control target key end

     0   :  { %s1399_s0 = inlined_call_operand.hbm [shape: bf16[4,8,32], index: 0, kind: input, shape index: {}]   ;;  %s1400_s1 = inlined_call_operand.hbm [shape: bf16[4,8,32], index: 1, kind: input, shape index: {}]   ;;  %s1401_s2 = inlined_call_operand.hbm [shape: bf16[4,8,32], index: 2, kind: input, shape index: {}]   ;;  %s1402_s3 = inlined_call_operand.hbm [shape: bf16[1,8,8], index: 3, kind: input, shape index: {}]   ;;  %s1403_s4 = inlined_call_operand.hbm [shape: f32[4,8,32], index: 4, kind: output, shape index: {0}]   ;;  %s1404_s5 = inlined_call_operand.hbm [shape: f32[4,8,8], index: 5, kind: output, shape index: {1}]  }
   0x1   :  { %1415 = sst [smem:[#allocation23_spill]] %s1399_s0 }
   0x2   :  { %1416 = sst [smem:[#allocation24_spill]] %s1400_s1 }
   0x3   :  { %1417 = sst [smem:[#allocation25_spill]] %s1402_s3 }
   0x4   :  { %11 = vsyncpa [#allocation3], 0 }
   0x5   :  { %13 = vsyncpa [#allocation3 + $0x1], 0 }
   0x6   :  { %14 = vsyncpa [#allocation6], 0 }
   0x7   :  { %16 = vsyncpa [#allocation6 + $0x1], 0 }
   0x8   :  { %17 = vsyncpa [#allocation9], 0 }
   0x9   :  { %18 = vsyncpa [#allocation4], 0 }
   0xa   :  { %20 = vsyncpa [#allocation4 + $0x1], 0 }
   0xb   :  { %21 = vsyncpa [#allocation12], 0 }
   0xc   :  { %23 = vsyncpa [#allocation12 + $0x1], 0  ;;  %s1159_s18 = smov 0   ;;  %s1161_s19 = smov 0  }
   0xd   :  { %s1163_s20 = smov 0   ;;  %s1165_s21 = smov 0  }
   0xe   :  { %s1167_s22 = smov 0   ;;  %s1169_s23 = smov 0  }
   0xf LB: > { %1418 = sst [smem:[#allocation18_spill]] %s1118_s22  ;;  %s41_s24 = sadd.s32 1, %s1118_s22  ;;  %s1122_s23 = sphi %s1169_s23, %s29_s23   ;;  %s1118_s22 = sphi %s1167_s22, %s1438_s22   ;;  %s1114_s21 = sphi %s1165_s21, %s1437_s21   ;;  %s1110_s20 = sphi %s1163_s20, %s1441_s20   ;;  %s1106_s19 = sphi %s1161_s19, %s1440_s19   ;;  %s1102_s18 = sphi %s1159_s18, %s1439_s18  }
  0x10   : > { %1419 = sst [smem:[#allocation19_spill]] %s1122_s23  ;;  %s50_s25 = sadd.s32 1, %s1110_s20 }
  0x11   : > { %p43_p0 = scmp.ge.s32.totalorder %s41_s24, 2  ;;  %p57_p1 = scmp.ne.s32.totalorder %s1110_s20, %s1106_s19 }
  0x12   : > { %p58_p2 = scmp.eq.s32.totalorder %s1122_s23, 0  ;;  %p746_p3 = scmp.ge.s32.totalorder %s1122_s23, 2 }
  0x13   : > { %s1443_s24 = smov (%p43_p0, %s41_s24), 0  ;;  %p816_p5 = scmp.lt.s32.totalorder %s1122_s23, 2 }
  0x14   : > { %1420 = sst [smem:[#allocation20_spill]] %s1443_s24  ;;  %p59_p4 = por %p58_p2, %p57_p1 }
  0x15   : > { %s45_s26 = ssub.s32 %s1118_s22, %s1443_s24  ;;  %s1409_s27 = sand.u32 1, %s1110_s20  }
  0x16   : > { %p48_p6 = scmp.eq.s32.totalorder %s45_s26, 0  ;;  %s1206_s28 = sshll.u32 %s1409_s27, 3 }
  0x17   : > { %s1209_s29 = sshll.u32 %s1118_s22, 3  ;;  %p1211_p7 = pnand %p816_p5, %p59_p4 }
  0x18   : > { %s1216_s6 = scalar_select %p48_p6, %s1110_s20, %s50_s25  }
  0x19   : > { %s258_s7 = sand.u32 1, %s1122_s23   ;;  %s1423_s1 = sld [smem:[#allocation24_spill]] }
  0x1a   : > { %1422 = sst [smem:[#allocation21_spill]] %s1216_s6  ;;  %s262_s11 = scalar_lea.vmem [#allocation5], %s1206_s28 }
  0x1b   : > { %s270_s12 = sshll.u32 %s262_s11, 4  ;;  %s1224_s14 = scalar_lea.sflag [#allocation6], %s258_s7  ;;  %s271_s12 = int_to_ptr.vmem [resolvable:$true] %s270_s12 }
  0x1c   : > { %s1405_s15 = smov 64   ;;  %s1407_s16 = smov 4  }
  0x1d   : > { %s1233_s17 = sadd.s32 4294967295, %s1122_s23   ;;  %s743_s25 = sadd.s32 4294967294, %s1122_s23  }
  0x1e   : > { %p63_p8 = scmp.ne.s32.totalorder %s1106_s19, %s1102_s18  ;;  %p64_p9 = scmp.eq.s32.totalorder %s1233_s17, 0 }
  0x1f   : > { %s267_s10 = scalar_lea.hbm %s1423_s1, %s1209_s29  ;;  %p167_p10 = scmp.eq.s32.totalorder %s1233_s17, 1 }
  0x20   : > { %s268_s13 = sshll.u32 %s267_s10, 4  ;;  %p173_p11 = scmp.eq.s32.totalorder %s743_s25, 1  ;;  %s269_s13 = int_to_ptr.hbm [resolvable:$true] %s268_s13 }
  0x21   : > { %804 = dma.hbm_to_vmem [thread:$0]  (!%p1211_p7), %s269_s13, 128, %s271_s12, %s1224_s14, %s1405_s15, %s1405_s15, %s1407_s16  }
  0x22   : > { %p744_p12 = scmp.ge.s32.totalorder %s1122_s23, 1  ;;  %p1243_p13 = por %p64_p9, %p63_p8 }
  0x23   : > { %p1250_p0 = por %p167_p10, %p57_p1  ;;  %p1254_p2 = por %p173_p11, %p63_p8 }
  0x24   : > { %p208_p4 = scmp.lt.s32.totalorder %s1122_s23, 3  ;;  %s1428_s3 = sld [smem:[#allocation25_spill]] }
  0x25   : > { %s1426_s8 = scalar_select %p1254_p2, 1, 0 }
  0x26   : > { %p1262_p5 = pnand %p744_p12, %p208_p4  ;;  %s1126_s13 = smov [#allocation8]  }
  0x27   : > { %1427 = sst [smem:[#allocation22_spill]] %s1426_s8  ;;  %s224_s25 = sshll.u32 %s1126_s13, 4  ;;  %s225_s25 = int_to_ptr.vmem [resolvable:$true] %s224_s25 }
  0x28   : > { %p794_p1 = pneg %p1262_p5  ;;  %s1430_s0 = sld [smem:[#allocation23_spill]] }
  0x29   : > { %s239_s27 = scalar_lea.vmem [#allocation2], %s1206_s28  ;;  %s1432_s22 = smov 4  }
  0x2a   : > { %s222_s11 = sshll.u32 %s1428_s3, 4  ;;  %p795_p6 = pnand %p794_p1, %p64_p9  ;;  %s223_s11 = int_to_ptr.hbm [resolvable:$true] %s222_s11 }
  0x2b   : > { %s248_s1 = sshll.u32 %s239_s27, 4  ;;  %s1431_s3 = sand.u32 1, %s1110_s20   ;;  %s249_s1 = int_to_ptr.vmem [resolvable:$true] %s248_s1 }
  0x2c   : > { %797 = dma.hbm_to_vmem [thread:$0]  (!%p795_p6), %s223_s11, 64, %s225_s25, [#allocation9]  }
  0x2d   : > { %s236_s24 = scalar_lea.sflag [#allocation3], %s1431_s3  ;;  %s1433_s13 = smov 64  }
  0x2e   : > { %s245_s10 = scalar_lea.hbm %s1430_s0, %s1209_s29  ;;  %s289_s15 = scalar_lea.hbm %s1401_s2, %s1209_s29 }
  0x2f   : > { %s246_s16 = sshll.u32 %s245_s10, 4  ;;  %s284_s9 = scalar_lea.vmem [#allocation7], %s1206_s28  ;;  %s247_s16 = int_to_ptr.hbm [resolvable:$true] %s246_s16 }
  0x30   : > { %801 = dma.hbm_to_vmem [thread:$0]  (!%p1211_p7), %s247_s16, 128, %s249_s1, %s236_s24, %s1433_s13, %s1433_s13, %s1432_s22  }
  0x31   : > { %s292_s8 = sshll.u32 %s284_s9, 4  ;;  %s290_s0 = sshll.u32 %s289_s15, 4  ;;  %s293_s8 = int_to_ptr.vmem [resolvable:$true] %s292_s8  ;;  %s291_s0 = int_to_ptr.hbm [resolvable:$true] %s290_s0 }
  0x32   : > { %807 = dma.hbm_to_vmem [thread:$0]  (!%p1211_p7), %s291_s0, 128, %s293_s8, %s1224_s14, %s1433_s13, %s1433_s13, %s1432_s22  }
  0x33   : > { %304 = sbr.rel (%p1262_p5) target bundleno = 613 (0x265), region = 36  ;;  %s1296_s1 = sand.u32 (!%p1262_p5), 1, %s1106_s19  }
  0x34   : > { %s1299_s3 = sshll.u32 (!%p1262_p5), %s1296_s1, 3  ;;  %s307_s23 = scalar_lea.sflag (!%p1262_p5), [#allocation3], %s1296_s1 }
  0x35   : > { %s310_s24 = scalar_lea.vmem (!%p1262_p5), [#allocation2], %s1299_s3 }
  0x38   : > { %1081 = dma.done.wait (%p1243_p13), %s307_s23, 128  }
  0x39   : > { %1083 = vsyncadd (%p1243_p13), %s307_s23, 4294967168  ;;  %s316_s0 = sand.u32 1, %s1233_s17   ;;  %s320_s27 = scalar_lea.vmem [#allocation5], %s1299_s3 }
  0x3a   : > { %s317_s22 = scalar_lea.sflag [#allocation6], %s316_s0 }
  0x3b   : > { %1085 = dma.done.wait (%p1243_p13), %s317_s22, 256  }
  0x3c   : > { %1087 = vsyncadd (%p1243_p13), %s317_s22, 4294967040  ;;  %s330_s28 = scalar_lea.vmem [#allocation7], %s1299_s3 }
  0x3d   : > { %1089 = dma.done.wait (%p64_p9), [#allocation9], 64  }
  0x3e   : > { %1091 = vsyncadd (%p64_p9), [#allocation9], 4294967232  ;;  %vm392_vm0 = vcmask 261120   ;;  %v386_v0 = vld [vmem:[%s320_s27] sm:$0xf]  ;;  %vm431_vm1 = vcmask 64512  }
  0x3f   : > { %v387_v1 = vld [vmem:[%s320_s27 + $0x4] sm:$0xf]  ;;  %v397_v2 = vsel %vm392_vm0, %v386_v0, 0  ;;  %v384_v4 = vld [vmem:[%s310_s24] sm:$0xf]  ;;  %vm487_vm2 = vcmask 1043456  }
  0x40   : > { %v416_v3 = vsel %vm392_vm0, %v387_v1, 0  ;;  %406 = vmatpush.bf16.xpose.msra.mxu0 %v397_v2  ;;  %v385_v5 = vld [vmem:[%s310_s24 + $0x4] sm:$0xf]  ;;  %v390_v6 = vld [vmem:[#allocation8] sm:$0xf]  ;;  %s761_s29 = sshll.u32 %s1296_s1, 4 }
  0x41   : > { %425 = vmatpush.bf16.xpose.msra.mxu1 %v416_v3  ;;  %v391_v7 = vunpack.c.l.bf16 %v390_v6  ;;  %v388_v26 = vld [vmem:[%s330_s28] sm:$0xf]  ;;  %v389_v28 = vld [vmem:[%s330_s28 + $0x4] sm:$0xf]  ;;  %s377_s30 = scalar_lea.vmem [#allocation11], %s761_s29  ;;  %s778_s14 = sshll.u32 %s1114_s21, 4 }
  0x42   : > { %v489_v27 = vsel %vm487_vm2, %v388_v26, 0  ;;  %v508_v29 = vsel %vm487_vm2, %v389_v28, 0  ;;  %s564_s6 = sshll.u32 %s377_s30, 4  ;;  %s563_s26 = scalar_lea.hbm %s1404_s5, %s778_s14  ;;  %s565_s6 = int_to_ptr.vmem [resolvable:$true] %s564_s6 }
  0x43   : > { %498 = vmatpush.bf16.msra.mxu2 %v489_v27  ;;  %517 = vmatpush.bf16.msra.mxu3 %v508_v29  ;;  %s566_s8 = sshll.u32 %s563_s26, 4  ;;  %s533_s11 = scalar_lea.sflag [#allocation12], %s1296_s1  ;;  %s567_s8 = int_to_ptr.hbm [resolvable:$true] %s566_s8 }
  0x44   : > { %s1014_s12 = sshra.s32 %s567_s8, 4  ;;  %s1020_s15 = scalar_lea.hbm %s1404_s5, 32  ;;  %s1015_s12 = int_to_ptr.hbm [resolvable:$true] %s1014_s12 }
  0x45   : > { %s1016_s25 = scalar_lea.hbm %s1015_s12, 16  ;;  %p1021_p10 = scmp.lt.s32.totalorder %s1015_s12, %s1404_s5 }
  0x46   : > { %p1017_p7 = scmp.ne.s32.totalorder %s1015_s12, %s1016_s25  ;;  %p1022_p11 = scmp.lt.s32.totalorder %s1020_s15, %s1016_s25 }
  0x47   : > { %763 = vmatmul.msk.bf16.vlgmr.msra.gmra.mxu0 %vm392_vm0, %v384_v4 }
  0x48   : > { %764 = vmatmul.msk.bf16.vlgmr.msra.gmra.mxu1 %vm392_vm0, %v385_v5  ;;  %p1018_p8 = pnand %p1017_p7, %p1250_p0  ;;  %p1023_p12 = por %p1022_p11, %p1021_p10 }
  0x4a   : > { %p1019_p9 = pneg %p1018_p8 }
  0x4c   : > { %p1024_p13 = pnand %p1023_p12, %p1019_p9 }
  0xc4   : > { %v408_v8 = vpop.f32.mrf.mxu0 }
  0xc5   : > { %v427_v9 = vpop.f32.mrf.mxu1  ;;  %v409_v10 = vadd.f32 %v408_v8, %v391_v7 }
  0xc6   : > { %v428_v12 = vadd.f32 %v427_v9, %v391_v7 }
  0xc7   : > { %v432_v11 = vsel %vm431_vm1, %v409_v10, -inf }
  0xc8   : > { %433 = vmax.xlane.f32.xlu0 %v432_v11  ;;  %v435_v15 = vsel %vm431_vm1, %v428_v12, -inf }
  0xcc   : > { %v410_v13 = vpop.f32.mrf.mxu0 }
  0xcd   : > { %v429_v14 = vpop.f32.mrf.mxu1 }
  0xd0   : > { %436 = vmax.xlane.f32.xlu0 %v435_v15 }
 0x13b   : > { %v434_v16 = vpop.xlane.xlu0 %433 }
 0x13c   : > { %v438_v17 = vsub.f32 %v409_v10, %v434_v16 }
 0x13e   : > { %v440_v18 = vmul.f32 1.442695, %v438_v17 }
 0x140   : > { %872 = vpow2.f32 %v440_v18 }
 0x143   : > { %v437_v19 = vpop.xlane.xlu0 %436 }
 0x144   : > { %v439_v20 = vsub.f32 %v428_v12, %v437_v19 }
 0x146   : > { %v873_v21 = vpop.eup %872  ;;  %v442_v22 = vmul.f32 1.442695, %v439_v20 }
 0x147   : > { %v444_v23 = vsel %vm431_vm1, %v873_v21, 0.0 }
 0x148   : > { %874 = vpow2.f32 %v442_v22  ;;  %445 = vadd.xlane.f32.xlu1 %v444_v23 }
 0x14e   : > { %v875_v24 = vpop.eup %874 }
 0x14f   : > { %v447_v25 = vsel %vm431_vm1, %v875_v24, 0.0 }
 0x150   : > { %448 = vadd.xlane.f32.xlu1 %v447_v25 }
 0x1bb   : > { %v446_v30 = vpop.xlane.xlu1 %445 }
 0x1bc   : > { %876 = vrcp.f32 %v446_v30  ;;  %v461_v35 = vand.u32 2147483648, %v446_v30  ;;  %v459_v37 = vand.u32 2147483647, %v446_v30  ;;  %vm455_vm4 = vweird.f32 %v446_v30 }
 0x1be   : > { %v462_v40 = vor.u32 1.1754944e-38, %v461_v35  ;;  %vm460_vm6 = vcmp.eq.f32.partialorder %v459_v37, 8.507059e+37 }
 0x1c2   : > { %v877_v31 = vpop.eup %876 }
 0x1c3   : > { %v451_v32 = vmul.f32 %v877_v31, %v446_v30  ;;  %v449_v33 = vpop.xlane.xlu1 %448  ;;  %vm456_vm3 = vweird.f32 %v877_v31 }
 0x1c4   : > { %878 = vrcp.f32 %v449_v33  ;;  %vm457_vm5 = vmor %vm455_vm4, %vm456_vm3  ;;  %v476_v46 = vand.u32 2147483648, %v449_v33  ;;  %v474_v48 = vand.u32 2147483647, %v449_v33  ;;  %vm470_vm8 = vweird.f32 %v449_v33 }
 0x1c5   : > { %v452_v34 = vsub.f32 1.0, %v451_v32 }
 0x1c6   : > { %v477_v51 = vor.u32 1.1754944e-38, %v476_v46  ;;  %vm475_vm10 = vcmp.eq.f32.partialorder %v474_v48, 8.507059e+37 }
 0x1c7   : > { %v453_v36 = vmul.f32 %v877_v31, %v452_v34 }
 0x1c9   : > { %v454_v38 = vadd.f32 %v877_v31, %v453_v36 }
 0x1ca   : > { %v879_v39 = vpop.eup %878 }
 0x1cb   : > { %v466_v41 = vmul.f32 %v879_v39, %v449_v33  ;;  %v458_v42 = vsel %vm457_vm5, %v877_v31, %v454_v38  ;;  %vm471_vm7 = vweird.f32 %v879_v39 }
 0x1cc   : > { %v463_v43 = vsel %vm460_vm6, %v462_v40, %v458_v42  ;;  %vm472_vm9 = vmor %vm470_vm8, %vm471_vm7 }
 0x1cd   : > { %v467_v44 = vsub.f32 1.0, %v466_v41  ;;  %v480_v45 = vmul.f32 %v873_v21, %v463_v43 }
 0x1cf   : > { %v468_v47 = vmul.f32 %v879_v39, %v467_v44  ;;  %v482_v49 = vpack.c.bf16 %v480_v45, %v480_v45  ;;  %525 = vst.msk [vmem:[%s377_s30] sm:$0xff] %vm431_vm1, %v480_v45 }
 0x1d1   : > { %v469_v50 = vadd.f32 %v879_v39, %v468_v47  ;;  %765 = vmatmul.msk.bf16.vlgmr.msra.gmra.mxu2 %vm431_vm1, %v482_v49 }
 0x1d3   : > { %v473_v52 = vsel %vm472_vm9, %v879_v39, %v469_v50 }
 0x1d4   : > { %v478_v53 = vsel %vm475_vm10, %v477_v51, %v473_v52 }
 0x1d5   : > { %v481_v54 = vmul.f32 %v875_v24, %v478_v53 }
 0x1d7   : > { %v483_v55 = vpack.c.bf16 %v481_v54, %v481_v54  ;;  %526 = vst.msk [vmem:[%s377_s30 + $0x8] sm:$0xff] %vm431_vm1, %v481_v54 }
 0x1d9   : > { %766 = vmatmul.msk.bf16.vlgmr.msra.gmra.mxu3 %vm431_vm1, %v483_v55 }
 0x1da   : > { %1027 = shalt.err (!%p1024_p13)
}
 0x1db   : > { %s1127_s3 = smov 128   ;;  %s1128_s23 = smov 8  }
 0x1dc   : > { %791 = dma.vmem_to_hbm [thread:$0]  (%p1250_p0), %s565_s6, 256, %s567_s8, %s533_s11, %s1127_s3, %s1127_s3, %s1128_s23  }
 0x1dd   : > { %s370_s24 = scalar_lea.vmem [#allocation10], %s761_s29  ;;  %s545_s27 = scalar_lea.hbm %s1403_s4, %s778_s14 }
 0x1de   : > { %s546_s28 = sshll.u32 %s370_s24, 4  ;;  %s548_s30 = sshll.u32 %s545_s27, 4  ;;  %s547_s28 = int_to_ptr.vmem [resolvable:$true] %s546_s28  ;;  %s549_s30 = int_to_ptr.hbm [resolvable:$true] %s548_s30 }
 0x1df   : > { %s528_s16 = scalar_lea.sflag [#allocation4], %s1296_s1  ;;  %s1042_s6 = sshra.s32 %s549_s30, 4  ;;  %s1043_s6 = int_to_ptr.hbm [resolvable:$true] %s1042_s6 }
 0x1e0   : > { %s1044_s17 = scalar_lea.hbm %s1043_s6, 16  ;;  %s1048_s14 = scalar_lea.hbm %s1403_s4, 32 }
 0x1e1   : > { %p1045_p4 = scmp.ne.s32.totalorder %s1043_s6, %s1044_s17  ;;  %p1049_p6 = scmp.lt.s32.totalorder %s1043_s6, %s1403_s4 }
 0x1e2   : > { %p1050_p7 = scmp.lt.s32.totalorder %s1048_s14, %s1044_s17 }
 0x1e3   : > { %p1046_p5 = pnand %p1045_p4, %p1250_p0 }
 0x1e4   : > { %p1051_p8 = por %p1050_p7, %p1049_p6 }
 0x1e5   : > { %p1047_p1 = pneg %p1046_p5 }
 0x1e7   : > { %p1052_p9 = pnand %p1051_p8, %p1047_p1 }
 0x254   : > { %v500_v56 = vpop.f32.mrf.mxu2 }
 0x255   : > { %523 = vst.msk [vmem:[%s370_s24] sm:$0xff] %vm392_vm0, %v500_v56 }
 0x25c   : > { %v502_v57 = vpop.f32.mrf.mxu2  ;;  %v519_v58 = vpop.f32.mrf.mxu3 }
 0x25d   : > { %524 = vst.msk [vmem:[%s370_s24 + $0x8] sm:$0xff] %vm392_vm0, %v519_v58 }
 0x25e   : > { %1055 = shalt.err (!%p1052_p9)
}
 0x25f   : > { %790 = dma.vmem_to_hbm [thread:$0]  (%p1250_p0), %s547_s28, 256, %s549_s30, %s528_s16, %s1127_s3, %s1127_s3, %s1128_s23  }
 0x264   : > { %v521_v59 = vpop.f32.mrf.mxu3 }
 0x265 PF: > { %s1435_s12 = sld [smem:[#allocation19_spill]]  ;;  %s581_s25 = sand.u32 1, %s1102_s18  }
 0x266   : > { %p809_p10 = pnand %p746_p3, %p1254_p2  ;;  %s582_s10 = scalar_lea.sflag [#allocation4], %s581_s25 }
 0x268   : > { %p810_p11 = pneg %p809_p10 }
 0x26a   : > { %1093 = dma.done.wait (%p810_p11), %s582_s10, 256  }
 0x26b   : > { %1095 = vsyncadd (%p810_p11), %s582_s10, 4294967040  ;;  %s592_s13 = scalar_lea.sflag [#allocation12], %s581_s25 }
 0x26c   : > { %1097 = dma.done.wait (%p810_p11), %s592_s13, 256  }
 0x26d   : > { %1099 = vsyncadd (%p810_p11), %s592_s13, 4294967040  ;;  %s29_s23 = sadd.s32 1, %s1435_s12   ;;  %s1436_s7 = sld [smem:[#allocation21_spill]] }
 0x26e   : > { %p26_p12 = scmp.ge.s32.totalorder %s29_s23, 4   ;;  %s1437_s21 = sld [smem:[#allocation18_spill]] }
 0x26f   : > { %s1438_s22 = sld [smem:[#allocation20_spill]]  ;;  %s1439_s18 = smov %s1106_s19 }
 0x270   : > { %s1440_s19 = smov %s1110_s20  ;;  %28 = sbr.rel (!%p26_p12) target bundleno = 15 (0xf), region = 127 }
 0x273   : > { %s1441_s20 = smov %s1436_s7 }
 0x275   :  { %598 = vsyncpa [#allocation3], 1 }
 0x276   :  { %600 = vsyncpa [#allocation3 + $0x1], 1 }
 0x277   :  { %601 = vsyncpa [#allocation6], 1 }
 0x278   :  { %603 = vsyncpa [#allocation6 + $0x1], 1 }
 0x279   :  { %604 = vsyncpa [#allocation9], 1 }
 0x27a   :  { %605 = vsyncpa [#allocation4], 1 }
 0x27b   :  { %607 = vsyncpa [#allocation4 + $0x1], 1 }
 0x27c   :  { %608 = vsyncpa [#allocation12], 1 }
 0x27d   :  { %610 = vsyncpa [#allocation12 + $0x1], 1 }

</bundles_post_ra>
